<compile_context>
chip_gen: v7x
topology: tpu7x:2x2x1
jax: 0.10.0
libtpu: 0.0.40
codegen_flags: <defaults>
</compile_context>

<pallas_src>
import functools

import jax
import jax.numpy as jnp
from jax import lax
from jax.experimental import pallas as pl
from jax.experimental.pallas import tpu as pltpu


def _focal_kernel(x_ref, t_ref, a_ref, o_ref, *, gamma):
    x = x_ref[0].astype(jnp.float32)          # (C, T) logits
    t = t_ref[0]                              # (1, T) int32 targets (-1 = pad)
    a = a_ref[...].astype(jnp.float32)        # (C, 1) per-class weight

    # one-hot of targets via iota compare (no gather on TPU); padded lanes
    # (target == -1) match no class -> all-zero column -> w_t = 0 -> focal = 0.
    cls = lax.broadcasted_iota(jnp.int32, x.shape, 0)        # (C, T)
    onehot = (cls == t).astype(jnp.float32)                  # (C, T)

    # numerically-stable log-softmax pieces (class axis = sublane axis)
    m = jnp.max(x, axis=0, keepdims=True)                    # (1, T)
    e = jnp.exp(x - m)
    lse = jnp.log(jnp.sum(e, axis=0, keepdims=True)) + m     # (1, T)

    logit_t = jnp.sum(x * onehot, axis=0, keepdims=True)     # (1, T)
    logp_t = logit_t - lse                                   # log softmax at target
    p_t = jnp.exp(logp_t)                                    # softmax prob at target

    w_t = jnp.sum(a * onehot, axis=0, keepdims=True)         # alpha[target]
    ce = -w_t * logp_t                                       # weighted CE, 'none'

    one_minus = 1.0 - p_t
    g = float(gamma)
    if g == int(g):
        fw = lax.integer_pow(one_minus, int(g))              # VPU-only, NaN-safe
    else:
        fw = jnp.power(jnp.maximum(one_minus, 0.0), g)
    focal = fw * ce                                          # (1, T)

    # per-tile partial sum written to this tile's own lane-dense output block
    # (all 128 lanes carry the same value; the wrapper reads lane 0).
    s = jnp.sum(focal)
    o_ref[...] = jnp.full((1, 1, 1, 128), s, dtype=jnp.float32)


def focal_loss(inputs, targets, alpha=None, gamma=2, tile_hw=8192):
    """inputs: (B, C, H, W) float logits; targets: (B, H, W) int labels.
    Returns scalar mean focal loss (reduction='mean')."""
    B, C, H, W = inputs.shape
    HW = H * W
    N = B * HW

    # native layout (B, C, H*W): free reshape, no transpose / extra HBM pass.
    # Keep the input dtype (bf16 stays bf16); upcast happens inside the kernel.
    x = inputs.reshape(B, C, HW)
    t = targets.reshape(B, 1, HW).astype(jnp.int32)

    if alpha is None:
        a = jnp.ones((C, 1), dtype=jnp.float32)
    else:
        a = jnp.asarray(alpha, dtype=jnp.float32).reshape(C, 1)

    # lane tile: multiple of 128, capped so a double-buffered logits tile stays
    # around <= 2 x 4 MiB (safe for v5e 16 MiB scoped default and v7x 64 MiB),
    # and never larger than H*W rounded up to a lane multiple.
    itemsize = jnp.dtype(x.dtype).itemsize
    budget_lanes = max(128, ((4 * 1024 * 1024) // (C * itemsize)) // 128 * 128)
    tile = max(128, (int(tile_hw) // 128) * 128)
    tile = min(tile, budget_lanes, ((HW + 127) // 128) * 128)

    pad = (-HW) % tile
    if pad:
        x = jnp.pad(x, ((0, 0), (0, 0), (0, pad)))
        t = jnp.pad(t, ((0, 0), (0, 0), (0, pad)), constant_values=-1)  # sentinel
    n_tiles = (HW + pad) // tile

    kernel = functools.partial(_focal_kernel, gamma=gamma)

    partials = pl.pallas_call(
        kernel,
        out_shape=jax.ShapeDtypeStruct((B, n_tiles, 1, 128), jnp.float32),
        grid_spec=pltpu.PrefetchScalarGridSpec(
            num_scalar_prefetch=0,
            grid=(B, n_tiles),
            in_specs=[
                pl.BlockSpec((1, C, tile), lambda b, j: (b, 0, j)),   # logits tile
                pl.BlockSpec((1, 1, tile), lambda b, j: (b, 0, j)),   # targets tile
                pl.BlockSpec((C, 1), lambda b, j: (0, 0)),            # alpha (DMA'd once)
            ],
            out_specs=pl.BlockSpec((1, 1, 1, 128), lambda b, j: (b, j, 0, 0)),
        ),
        compiler_params=pltpu.CompilerParams(
            dimension_semantics=("parallel", "parallel"),
        ),
    )(x, t, a)

    # tiny final reduction + mean in JAX
    return jnp.sum(partials[:, :, 0, 0]) / jnp.float32(N)


def _reference(inputs, targets, alpha, gamma):
    B, C, H, W = inputs.shape
    x = jnp.transpose(inputs, (0, 2, 3, 1)).reshape(-1, C).astype(jnp.float32)
    t = targets.reshape(-1).astype(jnp.int32)
    logp = jax.nn.log_softmax(x, axis=1)
    logp_t = jnp.take_along_axis(logp, t[:, None], axis=1)[:, 0]
    p_t = jnp.exp(logp_t)
    w = jnp.ones((C,), jnp.float32) if alpha is None else jnp.asarray(alpha, jnp.float32)
    ce = -w[t] * logp_t
    return jnp.mean(((1.0 - p_t) ** gamma) * ce)


if __name__ == "__main__":
    key = jax.random.PRNGKey(0)
    k1, k2 = jax.random.split(key)

    B, C, H, W = 2, 4, 16, 16
    inputs = jax.random.normal(k1, (B, C, H, W), dtype=jnp.float32)
    targets = jax.random.randint(k2, (B, H, W), 0, C, dtype=jnp.int32)

    # deterministic per-class alpha weights
    alpha = jnp.array([0.25, 0.5, 0.75, 1.0], dtype=jnp.float32)
    gamma = 2

    loss = focal_loss(inputs, targets, alpha=alpha, gamma=gamma)
    loss = jax.block_until_ready(loss)

    ref = _reference(inputs, targets, alpha, gamma)
    assert jnp.allclose(loss, ref, rtol=1e-5, atol=1e-6), (loss, ref)

    print("KERNEL_OK")
</pallas_src>

<mosaic_0001>
module attributes {stable_mosaic.version = 11 : i64} {
  func.func @_focal_kernel(%arg0: i32, %arg1: i32, %arg2: memref<1x4x256xf32, #tpu.memory_space<vmem>>, %arg3: memref<1x1x256xi32, #tpu.memory_space<vmem>>, %arg4: memref<4x1xf32, #tpu.memory_space<vmem>>, %arg5: memref<1x1x1x128xf32, #tpu.memory_space<vmem>>) attributes {dimension_semantics = [#tpu.dimension_semantics<parallel>, #tpu.dimension_semantics<parallel>], iteration_bounds = array<i64: 2, 1>, scalar_prefetch = 0 : i64, scratch_operands = 0 : i64, tpu.core_type = #tpu.core_type<tc>, window_params = [{transform_indices = @transform_0, window_bounds = array<i64: 1, 4, 256>}, {transform_indices = @transform_1, window_bounds = array<i64: 1, 1, 256>}, {pipeline_mode = #tpu.pipeline_mode<synchronous>, transform_indices = @transform_2, window_bounds = array<i64: 4, 1>}, {transform_indices = @transform_3, window_bounds = array<i64: 1, 1, 1, 128>}]} {
    %c0 = arith.constant 0 : index
    %c0_0 = arith.constant 0 : index
    %c0_1 = arith.constant 0 : index
    %0 = vector.load %arg2[%c0, %c0_0, %c0_1] : memref<1x4x256xf32, #tpu.memory_space<vmem>>, vector<1x4x256xf32>
    %1 = vector.shape_cast %0 : vector<1x4x256xf32> to vector<4x256xf32>
    %c0_2 = arith.constant 0 : index
    %c0_3 = arith.constant 0 : index
    %c0_4 = arith.constant 0 : index
    %2 = vector.load %arg3[%c0_2, %c0_3, %c0_4] : memref<1x1x256xi32, #tpu.memory_space<vmem>>, vector<1x1x256xi32>
    %3 = vector.shape_cast %2 : vector<1x1x256xi32> to vector<1x256xi32>
    %c0_5 = arith.constant 0 : index
    %c0_6 = arith.constant 0 : index
    %4 = vector.load %arg4[%c0_5, %c0_6] : memref<4x1xf32, #tpu.memory_space<vmem>>, vector<4x1xf32>
    %5 = tpu.iota {dimensions = array<i32: 0>} : vector<4x256xi32>
    %6 = vector.broadcast %3 : vector<1x256xi32> to vector<4x256xi32>
    %7 = arith.cmpi eq, %5, %6 : vector<4x256xi32>
    %8 = arith.extui %7 : vector<4x256xi1> to vector<4x256xi32>
    %9 = arith.sitofp %8 : vector<4x256xi32> to vector<4x256xf32>
    %cst = arith.constant dense<0xFF800000> : vector<256xf32>
    %10 = vector.multi_reduction <maximumf>, %1, %cst [0] : vector<4x256xf32> to vector<256xf32>
    %11 = vector.shape_cast %10 : vector<256xf32> to vector<1x256xf32>
    %12 = vector.broadcast %11 : vector<1x256xf32> to vector<4x256xf32>
    %13 = arith.subf %1, %12 : vector<4x256xf32>
    %14 = math.exp %13 : vector<4x256xf32>
    %cst_7 = arith.constant dense<0.000000e+00> : vector<256xf32>
    %15 = vector.multi_reduction <add>, %14, %cst_7 [0] : vector<4x256xf32> to vector<256xf32>
    %16 = vector.shape_cast %15 : vector<256xf32> to vector<1x256xf32>
    %17 = math.log %16 : vector<1x256xf32>
    %18 = arith.addf %17, %11 : vector<1x256xf32>
    %19 = arith.mulf %1, %9 : vector<4x256xf32>
    %cst_8 = arith.constant dense<0.000000e+00> : vector<256xf32>
    %20 = vector.multi_reduction <add>, %19, %cst_8 [0] : vector<4x256xf32> to vector<256xf32>
    %21 = vector.shape_cast %20 : vector<256xf32> to vector<1x256xf32>
    %22 = arith.subf %21, %18 : vector<1x256xf32>
    %23 = math.exp %22 : vector<1x256xf32>
    %24 = vector.broadcast %4 : vector<4x1xf32> to vector<4x256xf32>
    %25 = arith.mulf %24, %9 : vector<4x256xf32>
    %cst_9 = arith.constant dense<0.000000e+00> : vector<256xf32>
    %26 = vector.multi_reduction <add>, %25, %cst_9 [0] : vector<4x256xf32> to vector<256xf32>
    %27 = vector.shape_cast %26 : vector<256xf32> to vector<1x256xf32>
    %cst_10 = arith.constant 0.000000e+00 : f32
    %28 = vector.broadcast %cst_10 : f32 to vector<1x256xf32>
    %29 = arith.subf %28, %27 : vector<1x256xf32>
    %30 = arith.mulf %29, %22 : vector<1x256xf32>
    %cst_11 = arith.constant 1.000000e+00 : f32
    %31 = vector.broadcast %cst_11 : f32 to vector<1x256xf32>
    %32 = arith.subf %31, %23 : vector<1x256xf32>
    %33 = arith.mulf %32, %32 : vector<1x256xf32>
    %34 = arith.mulf %33, %30 : vector<1x256xf32>
    %35 = vector.shape_cast %34 : vector<1x256xf32> to vector<1x1x256xf32>
    %cst_12 = arith.constant dense<0.000000e+00> : vector<1xf32>
    %36 = vector.multi_reduction <add>, %35, %cst_12 [1, 2] : vector<1x1x256xf32> to vector<1xf32>
    %37 = vector.shape_cast %36 : vector<1xf32> to vector<1x1x1xf32>
    %38 = vector.extract %37[0, 0, 0] : f32 from vector<1x1x1xf32>
    %39 = vector.broadcast %38 : f32 to vector<1x1x1x128xf32>
    %c0_13 = arith.constant 0 : index
    %c0_14 = arith.constant 0 : index
    %c0_15 = arith.constant 0 : index
    %c0_16 = arith.constant 0 : index
    %40 = vector.load %arg5[%c0_13, %c0_14, %c0_15, %c0_16] : memref<1x1x1x128xf32, #tpu.memory_space<vmem>>, vector<1x1x1x128xf32>
    tpu.vector_store %arg5[%c0_13, %c0_14, %c0_15, %c0_16], %39 {strides = array<i32>} : memref<1x1x1x128xf32, #tpu.memory_space<vmem>>, vector<1x1x1x128xf32>,
    return
  }
  func.func @transform_0(%arg0: i32, %arg1: i32) -> (i32, i32, i32) {
    %c0_i32 = arith.constant 0 : i32
    %c0_i32_0 = arith.constant 0 : i32
    return %arg0, %c0_i32, %arg1 : i32, i32, i32
  }
  func.func @transform_1(%arg0: i32, %arg1: i32) -> (i32, i32, i32) {
    %c0_i32 = arith.constant 0 : i32
    %c0_i32_0 = arith.constant 0 : i32
    return %arg0, %c0_i32, %arg1 : i32, i32, i32
  }
  func.func @transform_2(%arg0: i32, %arg1: i32) -> (i32, i32) {
    %c0_i32 = arith.constant 0 : i32
    %c0_i32_0 = arith.constant 0 : i32
    %c0_i32_1 = arith.constant 0 : i32
    return %c0_i32, %c0_i32_0 : i32, i32
  }
  func.func @transform_3(%arg0: i32, %arg1: i32) -> (i32, i32, i32, i32) {
    %c0_i32 = arith.constant 0 : i32
    %c0_i32_0 = arith.constant 0 : i32
    %c0_i32_1 = arith.constant 0 : i32
    return %arg0, %arg1, %c0_i32, %c0_i32_0 : i32, i32, i32, i32
  }
}

</mosaic_0001>

<bundles_post_ra>
// kernel: tpu_custom_call.1
= control target key start
LH: loop header
LB: loop body
LE: loop exit
PB: predicated region body
PF: predicated region fallthrough
CT: control target
= control target key end

     0   :  { %8 = vsyncpa [#allocation3], 0  ;;  %s907_s0 = inlined_call_operand.hbm [shape: f32[2,4,256], index: 0, kind: input, shape index: {}]   ;;  %s908_s1 = inlined_call_operand.vmem [shape: s32[2,1,256], index: 1, kind: input, shape index: {}]   ;;  %s909_s2 = inlined_call_operand.vmem [shape: f32[4,1], index: 2, kind: input, shape index: {}]   ;;  %s910_s3 = inlined_call_operand.hbm [shape: f32[2,1,1,128], index: 3, kind: output, shape index: {}]  }
   0x1   :  { %10 = vsyncpa [#allocation3 + $0x1], 0 }
   0x2   :  { %11 = vsyncpa [#allocation4], 0 }
   0x3   :  { %13 = vsyncpa [#allocation4 + $0x1], 0  ;;  %s718_s12 = smov 0   ;;  %s720_s13 = smov 0  }
   0x4   :  { %s722_s14 = smov 0   ;;  %s724_s15 = smov 0  }
   0x5   :  { %s726_s16 = smov 0   ;;  %s728_s17 = smov 0  }
   0x6 LB: > { %s486_s18 = sadd.s32 4294967295, %s692_s17   ;;  %s487_s19 = sadd.s32 4294967294, %s692_s17   ;;  %s692_s17 = sphi %s728_s17, %s19_s17   ;;  %s688_s16 = sphi %s726_s16, %s926_s16   ;;  %s684_s15 = sphi %s724_s15, %s925_s15   ;;  %s680_s14 = sphi %s722_s14, %s924_s14   ;;  %s676_s13 = sphi %s720_s13, %s923_s13   ;;  %s672_s12 = sphi %s718_s12, %s922_s12  }
   0x7   : > { %s31_s20 = sadd.s32 1, %s688_s16  ;;  %s40_s21 = sadd.s32 1, %s680_s14 }
   0x8   : > { %p33_p0 = scmp.ge.s32.totalorder %s31_s20, 2  ;;  %p47_p1 = scmp.ne.s32.totalorder %s680_s14, %s676_s13 }
   0x9   : > { %p48_p2 = scmp.eq.s32.totalorder %s692_s17, 0  ;;  %p53_p3 = scmp.ne.s32.totalorder %s676_s13, %s672_s12 }
   0xa   : > { %s928_s20 = smov (%p33_p0, %s31_s20), 0  ;;  %p54_p5 = scmp.eq.s32.totalorder %s486_s18, 0 }
   0xb   : > { %p759_p4 = por %p48_p2, %p47_p1  ;;  %s35_s23 = ssub.s32 %s688_s16, %s928_s20 }
   0xc   : > { %p128_p6 = scmp.eq.s32.totalorder %s486_s18, 1  ;;  %p38_p7 = scmp.eq.s32.totalorder %s35_s23, 0 }
   0xd   : > { %p765_p8 = por %p54_p5, %p53_p3  ;;  %p134_p10 = scmp.eq.s32.totalorder %s487_s19, 1 }
   0xe   : > { %p769_p9 = por %p128_p6, %p47_p1  ;;  %p516_p13 = scmp.lt.s32.totalorder %s692_s17, 2 }
   0xf   : > { %s774_s26 = scalar_select %p38_p7, %s680_s14, %s40_s21  }
  0x10   : > { %s914_s25 = scalar_select %p769_p9, 1, 0 }
  0x11   : > { %p776_p11 = por %p134_p10, %p53_p3  ;;  %s157_s28 = sand.u32 1, %s680_s14  }
  0x12   : > { %s490_s29 = sshll.u32 %s157_s28, 3  ;;  %s501_s30 = sshll.u32 %s688_s16, 7 }
  0x13   : > { %s915_s27 = scalar_select %p776_p11, 1, 0 }
  0x14   : > { %s787_s6 = scalar_lea.hbm %s907_s0, %s501_s30  ;;  %s161_s7 = scalar_lea.vmem [#allocation2], %s490_s29 }
  0x15   : > { %s171_s8 = sshll.u32 %s161_s7, 4  ;;  %p793_p0 = pnand %p516_p13, %p759_p4  ;;  %s789_s8 = int_to_ptr.vmem [resolvable:$true] %s171_s8 }
  0x16   : > { %s158_s10 = scalar_lea.sflag [#allocation3], %s157_s28  ;;  %s580_s11 = scalar_lea.hbm %s787_s6, 128 }
  0x17   : > { %p581_p3 = scmp.ne.s32.totalorder %s787_s6, %s580_s11  ;;  %p582_p5 = pneg %p793_p0 }
  0x18   : > { %s585_s21 = scalar_lea.hbm %s907_s0, 256  ;;  %p586_p4 = scmp.lt.u32.totalorder %s787_s6, %s907_s0 }
  0x19   : > { %p583_p6 = pnand %p582_p5, %p581_p3  ;;  %p587_p10 = scmp.lt.u32.totalorder %s585_s21, %s580_s11 }
  0x1a   : > { %p589_p12 = scmp.lt.u32.totalorder %s580_s11, %s787_s6 }
  0x1b   : > { %p584_p7 = pneg %p583_p6  ;;  %p588_p13 = por %p587_p10, %p586_p4 }
  0x1d   : > { %p590_p1 = por %p589_p12, %p588_p13 }
  0x1f   : > { %p591_p2 = pnand %p590_p1, %p584_p7 }
  0x21   : > { %594 = shalt.err (!%p591_p2)
}
  0x22   : > { %s595_s28 = scalar_lea.vmem %s789_s8, 128  ;;  %s694_s29 = smov [#allocation2]  }
  0x23   : > { %p596_p3 = scmp.ne.s32.totalorder %s789_s8, %s595_s28  ;;  %s600_s30 = sshll.u32 %s694_s29, 4  ;;  %s601_s30 = int_to_ptr.vmem [resolvable:$false] %s600_s30 }
  0x24   : > { %s602_s4 = scalar_lea.vmem %s601_s30, 256  ;;  %p603_p9 = scmp.lt.s32.totalorder %s789_s8, %s601_s30 }
  0x25   : > { %p598_p6 = pnand %p596_p3, %p582_p5  ;;  %p604_p4 = scmp.lt.s32.totalorder %s602_s4, %s595_s28 }
  0x27   : > { %p599_p11 = pneg %p598_p6  ;;  %p605_p10 = por %p604_p4, %p603_p9 }
  0x29   : > { %p606_p12 = pnand %p605_p10, %p599_p11 }
  0x2b   : > { %609 = shalt.err (!%p606_p12)
}
  0x2c   : > { %511 = dma.hbm_to_vmem [thread:$0]  (!%p793_p0), %s787_s6, 128, %s789_s8, %s158_s10  }
  0x2d   : > { %p917_p1 = scmp.lt.s32.totalorder %s692_s17, 3  ;;  %p918_p2 = scmp.ge.s32.totalorder %s692_s17, 1 }
  0x2f   : > { %p189_p5 = pnand %p918_p2, %p917_p1 }
  0x30   : > { %s829_s5 = sand.u32 (!%p189_p5), 1, %s676_s13  }
  0x31   : > { %192 = sbr.rel (%p189_p5) target bundleno = 430 (0x1ae), region = 32  ;;  %s494_s7 = sshll.u32 (!%p189_p5), %s829_s5, 3 }
  0x32   : > { %s195_s11 = scalar_lea.sflag (!%p189_p5), [#allocation3], %s829_s5  ;;  %s198_s18 = scalar_lea.vmem (!%p189_p5), [#allocation2], %s494_s7 }
  0x38   : > { %663 = dma.done.wait (%p765_p8), %s195_s11, 128  }
  0x39   : > { %665 = vsyncadd (%p765_p8), %s195_s11, 4294967168  ;;  %v695_v0 = vmov 0   ;;  %v240_v1 = vld [vmem:[%s909_s2] sm:$0xf]  ;;  %vm260_vm0 = vcmask 1043456   ;;  %p230_p8 = scmp.lt.s32.totalorder %s684_s15, 1  ;;  %v241_v21 = vlaneseq }
  0x3a   : > { %568 = vset.pattern.permute.xlu0 %v695_v0  ;;  %v238_v2 = vld [vmem:[%s198_s18] sm:$0xff]  ;;  %v696_v34 = vmov 0.0   ;;  %vm364_vm3 = vcmask 1040384   ;;  %s227_s22 = scalar_lea.vmem [#allocation5], %s829_s5  ;;  %s498_s28 = sshll.u32 %s684_s15, 4 }
  0x3b   : > { %335 = vperm.xlu0 %568, %v240_v1   ;;  %v258_v3 = vcombine.high %v238_v2, %v238_v2  ;;  %v261_v4 = vsel %vm260_vm0, %v238_v2, -inf  ;;  %s231_s24 = scalar_select %p230_p8, %s684_s15, 1  ;;  %v242_v22 = vshrl.u32 %v241_v21, 7 }
  0x3c   : > { %v262_v6 = vrot.slane %v261_v4, 4  ;;  %s393_s23 = sshll.u32 %s227_s22, 4  ;;  %s860_s7 = scalar_lea.hbm %s910_s3, %s498_s28  ;;  %s855_s23 = int_to_ptr.vmem [resolvable:$true] %s393_s23 }
  0x3d   : > { %v268_v5 = vsel %vm260_vm0, %v258_v3, -inf  ;;  %s495_s9 = sshll.u32 %s231_s24, 1  ;;  %v245_v24 = vsub.s32 0, %v242_v22  ;;  %v249_v25 = vsub.s32 1, %v242_v22  ;;  %s380_s11 = scalar_lea.sflag [#allocation4], %s829_s5 }
  0x3e   : > { %v269_v7 = vrot.slane %v268_v5, 4  ;;  %v263_v8 = vmax.f32 %v261_v4, %v262_v6  ;;  %s236_s21 = scalar_lea.vmem %s908_s1, %s495_s9  ;;  %s610_s18 = scalar_lea.vmem %s855_s23, 16 }
  0x3f   : > { %v239_v26 = vld [vmem:[%s236_s21] sm:$0x3]  ;;  %p611_p9 = scmp.ne.s32.totalorder %s855_s23, %s610_s18  ;;  %p919_p11 = scmp.ne.s32.totalorder %s914_s25, 0 }
  0x40   : > { %v270_v9 = vmax.f32 %v268_v5, %v269_v7  ;;  %v264_v10 = vrot.slane %v263_v8, 2  ;;  %v246_v28 = vrot.slane %v239_v26, %v245_v24  ;;  %v250_v29 = vrot.slane %v239_v26, %v249_v25  ;;  %s697_s15 = smov [#allocation5]  }
  0x41   : > { %p612_p0 = pnand %p611_p9, %p919_p11  ;;  %s614_s6 = sshll.u32 %s697_s15, 4  ;;  %s615_s6 = int_to_ptr.vmem [resolvable:$false] %s614_s6 }
  0x42   : > { %v271_v11 = vrot.slane %v270_v9, 2  ;;  %v265_v12 = vmax.f32 %v263_v8, %v264_v10  ;;  %vm251_vm1 = vcmp.eq.s32.totalorder %v242_v22, %v246_v28  ;;  %vm252_vm2 = vcmp.eq.s32.totalorder %v242_v22, %v250_v29  ;;  %s616_s8 = scalar_lea.vmem %s615_s6, 32  ;;  %p617_p13 = scmp.lt.s32.totalorder %s855_s23, %s615_s6 }
  0x43   : > { %v496_v35 = vsel %vm251_vm1, 1.0, %v696_v34  ;;  %v497_v36 = vsel %vm252_vm2, 1.0, %v696_v34  ;;  %p613_p7 = pneg %p612_p0  ;;  %p618_p3 = scmp.lt.s32.totalorder %s616_s8, %s610_s18 }
  0x44   : > { %v272_v13 = vmax.f32 %v270_v9, %v271_v11  ;;  %v266_v14 = vrot.slane %v265_v12, 1  ;;  %v307_v39 = vcombine.low %v496_v35, %v497_v36 }
  0x45   : > { %p619_p6 = por %p618_p3, %p617_p13 }
  0x46   : > { %v273_v15 = vrot.slane %v272_v13, 1  ;;  %v267_v16 = vmax.f32 %v265_v12, %v266_v14  ;;  %v309_v42 = vmul.f32 %v307_v39, %v238_v2 }
  0x47   : > { %p620_p4 = pnand %p619_p6, %p613_p7 }
  0x48   : > { %v274_v17 = vmax.f32 %v272_v13, %v273_v15  ;;  %v311_v45 = vcombine.high %v309_v42, %v309_v42  ;;  %v313_v48 = vsel %vm260_vm0, %v309_v42, 0.0 }
  0x49   : > { %v314_v51 = vrot.slane %v313_v48, 4 }
  0x4a   : > { %v277_v18 = vcombine.low %v267_v16, %v274_v17  ;;  %v320_v49 = vsel %vm260_vm0, %v311_v45, 0.0 }
  0x4b   : > { %v321_v53 = vrot.slane %v320_v49, 4  ;;  %v315_v54 = vadd.f32 %v314_v51, %v313_v48 }
  0x4c   : > { %v279_v19 = vsub.f32 %v238_v2, %v277_v18 }
  0x4d   : > { %v322_v55 = vadd.f32 %v321_v53, %v320_v49  ;;  %v316_v56 = vrot.slane %v315_v54, 2 }
  0x4e   : > { %v280_v20 = vmul.f32 1.442695, %v279_v19 }
  0x4f   : > { %v323_v57 = vrot.slane %v322_v55, 2  ;;  %v317_v58 = vadd.f32 %v316_v56, %v315_v54 }
  0x50   : > { %570 = vpow2.f32 %v280_v20 }
  0x51   : > { %v324_v60 = vadd.f32 %v323_v57, %v322_v55  ;;  %v318_v63 = vrot.slane %v317_v58, 1 }
  0x53   : > { %v325_v1 = vrot.slane %v324_v60, 1  ;;  %v319_v3 = vadd.f32 %v318_v63, %v317_v58 }
  0x55   : > { %v326_v5 = vadd.f32 %v325_v1, %v324_v60 }
  0x5a   : > { %v571_v23 = vpop.eup %570 }
  0x5b   : > { %v283_v27 = vcombine.high %v571_v23, %v571_v23  ;;  %v285_v30 = vsel %vm260_vm0, %v571_v23, 0.0 }
  0x5c   : > { %v286_v32 = vrot.slane %v285_v30, 4 }
  0x5d   : > { %v292_v31 = vsel %vm260_vm0, %v283_v27, 0.0 }
  0x5e   : > { %v293_v33 = vrot.slane %v292_v31, 4  ;;  %v287_v37 = vadd.f32 %v286_v32, %v285_v30 }
  0x60   : > { %v294_v38 = vadd.f32 %v293_v33, %v292_v31  ;;  %v288_v40 = vrot.slane %v287_v37, 2 }
  0x62   : > { %v295_v41 = vrot.slane %v294_v38, 2  ;;  %v289_v43 = vadd.f32 %v288_v40, %v287_v37 }
  0x64   : > { %v296_v44 = vadd.f32 %v295_v41, %v294_v38  ;;  %v290_v46 = vrot.slane %v289_v43, 1 }
  0x66   : > { %v297_v47 = vrot.slane %v296_v44, 1  ;;  %v291_v50 = vadd.f32 %v290_v46, %v289_v43 }
  0x68   : > { %v298_v52 = vadd.f32 %v297_v47, %v296_v44  ;;  %572 = vlog2.f32 %v291_v50 }
  0x6a   : > { %574 = vlog2.f32 %v298_v52 }
  0x72   : > { %v573_v59 = vpop.eup %572 }
  0x73   : > { %v300_v62 = vmul.f32 0.6931472, %v573_v59 }
  0x74   : > { %v575_v61 = vpop.eup %574 }
  0x75   : > { %v302_v0 = vmul.f32 0.6931472, %v575_v61  ;;  %v303_v2 = vadd.f32 %v300_v62, %v267_v16 }
  0x77   : > { %v304_v4 = vadd.f32 %v302_v0, %v274_v17  ;;  %v327_v6 = vsub.f32 %v319_v3, %v303_v2 }
  0x79   : > { %v328_v7 = vsub.f32 %v326_v5, %v304_v4  ;;  %v329_v8 = vmul.f32 1.442695, %v327_v6 }
  0x7b   : > { %v331_v9 = vmul.f32 1.442695, %v328_v7  ;;  %576 = vpow2.f32 %v329_v8 }
  0x7d   : > { %578 = vpow2.f32 %v331_v9 }
  0x85   : > { %v577_v20 = vpop.eup %576 }
  0x86   : > { %v358_v27 = vsub.f32 1.0, %v577_v20 }
  0x87   : > { %v579_v22 = vpop.eup %578 }
  0x88   : > { %v359_v28 = vsub.f32 1.0, %v579_v22  ;;  %v360_v33 = vmul.f32 %v358_v27, %v358_v27 }
  0x8a   : > { %v361_v34 = vmul.f32 %v359_v28, %v359_v28 }
  0xba   : > { %v336_v10 = vpop.permute.xlu0 %335 }
  0xbb   : > { %v338_v11 = vmul.f32 %v496_v35, %v336_v10  ;;  %v339_v12 = vmul.f32 %v497_v36, %v336_v10 }
  0xbd   : > { %v340_v13 = vsel %vm260_vm0, %v338_v11, 0.0  ;;  %v347_v14 = vsel %vm260_vm0, %v339_v12, 0.0 }
  0xbe   : > { %v341_v15 = vrot.slane %v340_v13, 4  ;;  %v348_v18 = vrot.slane %v347_v14, 4 }
  0xc0   : > { %v342_v19 = vadd.f32 %v341_v15, %v340_v13  ;;  %v349_v16 = vadd.f32 %v348_v18, %v347_v14 }
  0xc2   : > { %v343_v17 = vrot.slane %v342_v19, 2  ;;  %v350_v21 = vrot.slane %v349_v16, 2 }
  0xc4   : > { %v344_v23 = vadd.f32 %v343_v17, %v342_v19  ;;  %v351_v24 = vadd.f32 %v350_v21, %v349_v16 }
  0xc6   : > { %v345_v25 = vrot.slane %v344_v23, 1  ;;  %v352_v26 = vrot.slane %v351_v24, 1 }
  0xc8   : > { %v346_v29 = vadd.f32 %v345_v25, %v344_v23  ;;  %v353_v30 = vadd.f32 %v352_v26, %v351_v24 }
  0xca   : > { %v354_v31 = vsub.f32 0.0, %v346_v29  ;;  %v355_v32 = vsub.f32 0.0, %v353_v30 }
  0xcc   : > { %v356_v35 = vmul.f32 %v354_v31, %v327_v6  ;;  %v357_v36 = vmul.f32 %v355_v32, %v328_v7 }
  0xce   : > { %v362_v37 = vmul.f32 %v360_v33, %v356_v35  ;;  %v363_v38 = vmul.f32 %v361_v34, %v357_v36 }
  0xd0   : > { %v365_v39 = vsel %vm364_vm3, %v362_v37, 0.0  ;;  %v366_v40 = vsel %vm364_vm3, %v363_v38, 0.0 }
  0xd1   : > { %v367_v41 = vadd.f32 %v366_v40, %v365_v39 }
  0xd3   : > { %368 = vadd.xlane.f32.xlu0 %v367_v41 }
 0x160   : > { %v369_v42 = vpop.xlane.xlu0 %368 }
 0x161   : > { %v370_v43 = vrot.slane %v369_v42, 4 }
 0x163   : > { %v371_v44 = vadd.f32 %v370_v43, %v369_v42 }
 0x165   : > { %v372_v45 = vrot.slane %v371_v44, 2 }
 0x167   : > { %v373_v46 = vadd.f32 %v372_v45, %v371_v44 }
 0x169   : > { %v374_v47 = vrot.slane %v373_v46, 1 }
 0x16b   : > { %v375_v48 = vadd.f32 %v374_v47, %v373_v46 }
 0x16d   : > { %502 = vpush %v375_v48 }
 0x19e   : > { %s503_s29 = spop %502 }
 0x19f   : > { %v377_v49 = vstv %s503_s29 }
 0x1a0   : > { %378 = vst [vmem:[%s227_s22] sm:$0x1] %v377_v49 }
 0x1a1   : > { %623 = shalt.err (!%p620_p4)
}
 0x1a2   : > { %s624_s5 = scalar_lea.hbm %s860_s7, 16  ;;  %s628_s10 = scalar_lea.hbm %s910_s3, 32 }
 0x1a3   : > { %p625_p10 = scmp.ne.s32.totalorder %s860_s7, %s624_s5  ;;  %p629_p2 = scmp.lt.u32.totalorder %s860_s7, %s910_s3 }
 0x1a4   : > { %p630_p5 = scmp.lt.u32.totalorder %s628_s10, %s624_s5  ;;  %p632_p9 = scmp.lt.u32.totalorder %s624_s5, %s860_s7 }
 0x1a5   : > { %p626_p12 = pnand %p625_p10, %p919_p11 }
 0x1a6   : > { %p631_p8 = por %p630_p5, %p629_p2 }
 0x1a7   : > { %p627_p1 = pneg %p626_p12 }
 0x1a8   : > { %p633_p0 = por %p632_p9, %p631_p8 }
 0x1aa   : > { %p634_p7 = pnand %p633_p0, %p627_p1 }
 0x1ac   : > { %637 = shalt.err (!%p634_p7)
}
 0x1ad   : > { %506 = dma.vmem_to_hbm [thread:$0]  (%p919_p11), %s855_s23, 16, %s860_s7, %s380_s11  }
 0x1ae PF: > { %s405_s22 = sand.u32 1, %s672_s12   ;;  %p920_p13 = scmp.ne.s32.totalorder %s915_s27, 0 }
 0x1af   : > { %p921_p3 = scmp.ge.s32.totalorder %s692_s17, 2  ;;  %s406_s28 = scalar_lea.sflag [#allocation4], %s405_s22 }
 0x1b1   : > { %p513_p6 = pnand %p921_p3, %p920_p13 }
 0x1b3   : > { %667 = dma.done.wait (!%p513_p6), %s406_s28, 16  }
 0x1b4   : > { %669 = vsyncadd (!%p513_p6), %s406_s28, 4294967280  ;;  %s19_s17 = sadd.s32 1, %s692_s17   ;;  %s922_s12 = smov %s676_s13 }
 0x1b5   : > { %p16_p4 = scmp.ge.s32.totalorder %s19_s17, 4   ;;  %s923_s13 = smov %s680_s14 }
 0x1b6   : > { %s924_s14 = smov %s774_s26  ;;  %s925_s15 = smov %s688_s16 }
 0x1b7   : > { %s926_s16 = smov %s928_s20  ;;  %18 = sbr.rel (!%p16_p4) target bundleno = 6 (0x6), region = 80 }
 0x1be   :  { %410 = vsyncpa [#allocation3], 1 }
 0x1bf   :  { %412 = vsyncpa [#allocation3 + $0x1], 1 }
 0x1c0   :  { %413 = vsyncpa [#allocation4], 1 }
 0x1c1   :  { %415 = vsyncpa [#allocation4 + $0x1], 1 }

</bundles_post_ra>
